<compile_context>
chip_gen: v7x
topology: tpu7x:2x2x1
jax: 0.10.0
libtpu: 0.0.40
codegen_flags: <defaults>
</compile_context>

<pallas_src>
import functools

import jax
import jax.numpy as jnp
from jax.experimental import pallas as pl
from jax.experimental.pallas import tpu as pltpu


LANE = 128          # packed output slab width: policy logits in cols [0:no], value in col no
TM_DEFAULT = 1024   # batch tile (rows); tiny VMEM footprint, near HBM roofline per sweeps


def _round_up(x, m):
    return ((x + m - 1) // m) * m


def _fused_policy_value_kernel(x_ref, w1_ref, b1_ref, w2_ref, b2_ref,
                               w3_ref, b3_ref, out_ref):
    """One batch tile through the fused (policy ++ value) 3-layer MLP.

    Weights are pre-fused: layer-1 concatenated along N, layer-2 block-diagonal,
    layer-3 stacked along K with the two heads' output columns disjoint inside the
    128-lane slab, so three matmuls produce the packed (tm, 128) output directly.
    bf16 matmul inputs + bf16 tanh, f32 MXU accumulation, f32 bias adds.
    """
    x = x_ref[...].astype(jnp.bfloat16)
    h = jnp.tanh((jnp.dot(x, w1_ref[...], preferred_element_type=jnp.float32)
                  + b1_ref[...]).astype(jnp.bfloat16))
    h = jnp.tanh((jnp.dot(h, w2_ref[...], preferred_element_type=jnp.float32)
                  + b2_ref[...]).astype(jnp.bfloat16))
    out = (jnp.dot(h, w3_ref[...], preferred_element_type=jnp.float32)
           + b3_ref[...])
    out_ref[...] = out.astype(out_ref.dtype)


@functools.partial(jax.jit, static_argnames=("tm",))
def fused_policy_value_pallas(x, params, *, tm=TM_DEFAULT):
    """x: (B, obs_dim) f32. Returns packed (B, 128) bf16 slab (logits | value | zeros)."""
    B, in_dim = x.shape
    # Tile: multiple of 16 rows; capped so large batches get >= ~8 grid steps (keeps both
    # v7x TensorCores fed); tiny batches collapse to a single small tile.
    tm_cap = _round_up(max(pl.cdiv(B, 8), 1), 16)
    tm = max(16, min(tm, tm_cap))
    grid = (pl.cdiv(B, tm),)          # ragged last block: OOB reads are benign (rows masked
                                      # on write), so no wrapper pad / slice passes over HBM.

    const_map = lambda i: (0, 0)      # fused weights/biases: same block every step -> resident
    in_specs = [pl.BlockSpec((tm, in_dim), lambda i: (i, 0))]
    operands = [x]
    for name in ("w1", "b1", "w2", "b2", "w3", "b3"):
        arr = params[name]
        in_specs.append(pl.BlockSpec(arr.shape, const_map))
        operands.append(arr)

    return pl.pallas_call(
        _fused_policy_value_kernel,
        out_shape=jax.ShapeDtypeStruct((B, LANE), jnp.bfloat16),
        grid=grid,
        in_specs=in_specs,
        out_specs=pl.BlockSpec((tm, LANE), lambda i: (i, 0)),
        compiler_params=pltpu.CompilerParams(
            dimension_semantics=("parallel",)),
    )(*operands)


def init_mlp_params(key, in_dim, hidden, out_dim):
    """Deterministic synthetic init (shapes match build_mlp with n_layers=2), f32."""
    ks = jax.random.split(key, 6)

    def lin(kw, kb, fan_in, fan_out):
        scale = 1.0 / jnp.sqrt(jnp.float32(fan_in))
        w = jax.random.uniform(kw, (fan_in, fan_out), jnp.float32, -scale, scale)
        b = jax.random.uniform(kb, (1, fan_out), jnp.float32, -scale, scale)
        return w, b

    w1, b1 = lin(ks[0], ks[1], in_dim, hidden)
    w2, b2 = lin(ks[2], ks[3], hidden, hidden)
    w3, b3 = lin(ks[4], ks[5], hidden, out_dim)
    return {"w1": w1, "b1": b1, "w2": w2, "b2": b2, "w3": w3, "b3": b3}


def _pack_fused_params(pi, vf, num_outputs, lane_total=LANE):
    """Fuse policy + value MLP weights into single layer-wise matrices (bf16 weights, f32 bias).

    Layer 1: concat along N. Layer 2: block-diagonal (zero cross blocks -> numerically
    identical to per-head matmuls). Layer 3: stacked along K; policy head writes lanes
    [0:num_outputs], value head writes lane num_outputs; remaining lanes are zero.
    """
    hp = pi["w1"].shape[1]                  # 128
    hv = vf["w1"].shape[1]                  # 64
    H = hp + hv                             # 192

    w1 = jnp.concatenate([pi["w1"], vf["w1"]], axis=1)               # (obs_dim, 192)
    b1 = jnp.concatenate([pi["b1"], vf["b1"]], axis=1)               # (1, 192)

    w2 = jnp.zeros((H, H), jnp.float32)
    w2 = w2.at[:hp, :hp].set(pi["w2"]).at[hp:, hp:].set(vf["w2"])    # (192, 192) block-diag
    b2 = jnp.concatenate([pi["b2"], vf["b2"]], axis=1)               # (1, 192)

    w3 = jnp.zeros((H, lane_total), jnp.float32)
    w3 = w3.at[:hp, :num_outputs].set(pi["w3"])
    w3 = w3.at[hp:, num_outputs:num_outputs + 1].set(vf["w3"])       # (192, 128)
    b3 = jnp.zeros((1, lane_total), jnp.float32)
    b3 = b3.at[:, :num_outputs].set(pi["b3"])
    b3 = b3.at[:, num_outputs:num_outputs + 1].set(vf["b3"])         # (1, 128)

    return {
        "w1": w1.astype(jnp.bfloat16), "b1": b1,
        "w2": w2.astype(jnp.bfloat16), "b2": b2,
        "w3": w3.astype(jnp.bfloat16), "b3": b3,
    }


class FullyConnectedNetworkPallas:
    """JAX/Pallas re-implementation of the RLlib FullyConnectedNetwork forward path."""

    def __init__(self, obs_dim, num_outputs, key,
                 n_layers=2, size=128, baseline_n_layers=2, baseline_size=64):
        assert n_layers == 2 and baseline_n_layers == 2   # matches module defaults
        assert num_outputs + 1 <= LANE
        self.num_outputs = num_outputs
        k_pi, k_v = jax.random.split(key)
        pi = init_mlp_params(k_pi, obs_dim, size, num_outputs)
        vf = init_mlp_params(k_v, obs_dim, baseline_size, 1)
        self.pi_params_f32 = pi            # kept for the f32 reference check
        self.v_params_f32 = vf
        self.fused_params = _pack_fused_params(pi, vf, num_outputs)
        self._last_obs = None
        self._value = None

    def forward(self, obs, state):
        obs = obs.astype(jnp.float32)
        self._last_obs = obs.reshape(obs.shape[0], -1)                 # glue: flatten in JAX
        slab = fused_policy_value_pallas(self._last_obs, self.fused_params)
        # Single narrow slice of the packed bf16 slab (num_outputs+1 lanes), then split.
        head = slab[:, :self.num_outputs + 1].astype(jnp.float32)
        outputs = head[:, :self.num_outputs]
        self._value = head[:, self.num_outputs]                        # already squeezed
        return outputs, state

    def value_function(self):
        # Fused with forward(): obs is read from HBM exactly once per step.
        return self._value


def _ref_mlp3(x, p):
    h1 = jnp.tanh(x @ p["w1"] + p["b1"])
    h2 = jnp.tanh(h1 @ p["w2"] + p["b2"])
    return h2 @ p["w3"] + p["b3"]


if __name__ == "__main__":
    key = jax.random.PRNGKey(0)
    k_obs, k_obs2, k_model = jax.random.split(key, 3)

    batch, obs_dim, num_outputs = 4, 16, 8
    obs = jax.random.normal(k_obs, (batch, obs_dim), jnp.float32)

    model = FullyConnectedNetworkPallas(obs_dim, num_outputs, k_model)

    logits, state = model.forward(obs, state=[])
    value = model.value_function()
    logits = jax.block_until_ready(logits)
    value = jax.block_until_ready(value)

    # Correctness vs. pure-f32 JAX reference. bf16 matmul inputs / bf16 tanh / bf16 output
    # slab are a deliberate precision trade -> loosened tolerance.
    ref_logits = _ref_mlp3(obs, model.pi_params_f32)
    ref_value = _ref_mlp3(obs, model.v_params_f32)[:, 0]
    assert logits.shape == (batch, num_outputs)
    assert value.shape == (batch,)
    assert jnp.allclose(logits, ref_logits, atol=3e-2, rtol=3e-2)
    assert jnp.allclose(value, ref_value, atol=3e-2, rtol=3e-2)

    # Second check: multi-step grid with a ragged last block (no wrapper pad/slice).
    batch2 = 100
    obs2 = jax.random.normal(k_obs2, (batch2, obs_dim), jnp.float32)
    logits2, _ = model.forward(obs2, state=[])
    value2 = jax.block_until_ready(model.value_function())
    logits2 = jax.block_until_ready(logits2)
    ref_logits2 = _ref_mlp3(obs2, model.pi_params_f32)
    ref_value2 = _ref_mlp3(obs2, model.v_params_f32)[:, 0]
    assert logits2.shape == (batch2, num_outputs)
    assert value2.shape == (batch2,)
    assert jnp.allclose(logits2, ref_logits2, atol=3e-2, rtol=3e-2)
    assert jnp.allclose(value2, ref_value2, atol=3e-2, rtol=3e-2)

    print("KERNEL_OK")
</pallas_src>

<mosaic_0001>
module attributes {stable_mosaic.version = 11 : i64} {
  func.func @_fused_policy_value_kernel(%arg0: i32, %arg1: memref<16x16xf32, #tpu.memory_space<vmem>>, %arg2: memref<16x192xbf16, #tpu.memory_space<vmem>>, %arg3: memref<1x192xf32, #tpu.memory_space<vmem>>, %arg4: memref<192x192xbf16, #tpu.memory_space<vmem>>, %arg5: memref<1x192xf32, #tpu.memory_space<vmem>>, %arg6: memref<192x128xbf16, #tpu.memory_space<vmem>>, %arg7: memref<1x128xf32, #tpu.memory_space<vmem>>, %arg8: memref<16x128xbf16, #tpu.memory_space<vmem>>) attributes {dimension_semantics = [#tpu.dimension_semantics<parallel>], iteration_bounds = array<i64: 1>, scalar_prefetch = 0 : i64, scratch_operands = 0 : i64, tpu.core_type = #tpu.core_type<tc>, window_params = [{transform_indices = @transform_0, window_bounds = array<i64: 16, 16>}, {pipeline_mode = #tpu.pipeline_mode<synchronous>, transform_indices = @transform_1, window_bounds = array<i64: 16, 192>}, {pipeline_mode = #tpu.pipeline_mode<synchronous>, transform_indices = @transform_2, window_bounds = array<i64: 1, 192>}, {pipeline_mode = #tpu.pipeline_mode<synchronous>, transform_indices = @transform_3, window_bounds = array<i64: 192, 192>}, {pipeline_mode = #tpu.pipeline_mode<synchronous>, transform_indices = @transform_4, window_bounds = array<i64: 1, 192>}, {pipeline_mode = #tpu.pipeline_mode<synchronous>, transform_indices = @transform_5, window_bounds = array<i64: 192, 128>}, {pipeline_mode = #tpu.pipeline_mode<synchronous>, transform_indices = @transform_6, window_bounds = array<i64: 1, 128>}, {transform_indices = @transform_7, window_bounds = array<i64: 16, 128>}]} {
    %c0 = arith.constant 0 : index
    %c0_0 = arith.constant 0 : index
    %0 = vector.load %arg1[%c0, %c0_0] : memref<16x16xf32, #tpu.memory_space<vmem>>, vector<16x16xf32>
    %1 = arith.truncf %0 : vector<16x16xf32> to vector<16x16xbf16>
    %c0_1 = arith.constant 0 : index
    %c0_2 = arith.constant 0 : index
    %2 = vector.load %arg2[%c0_1, %c0_2] : memref<16x192xbf16, #tpu.memory_space<vmem>>, vector<16x192xbf16>
    %cst = arith.constant dense<0.000000e+00> : vector<16x192xf32>
    %3 = tpu.matmul %1, %2, %cst {dimension_numbers = #tpu.dot_dimension_numbers<[1], [0], [0], [1], [0, 0, 1, 1], [], []>} : vector<16x16xbf16>, vector<16x192xbf16>, vector<16x192xf32> -> vector<16x192xf32>
    %c0_3 = arith.constant 0 : index
    %c0_4 = arith.constant 0 : index
    %4 = vector.load %arg3[%c0_3, %c0_4] : memref<1x192xf32, #tpu.memory_space<vmem>>, vector<1x192xf32>
    %5 = vector.broadcast %4 : vector<1x192xf32> to vector<16x192xf32>
    %6 = arith.addf %3, %5 : vector<16x192xf32>
    %7 = arith.truncf %6 : vector<16x192xf32> to vector<16x192xbf16>
    %8 = math.tanh %7 : vector<16x192xbf16>
    %c0_5 = arith.constant 0 : index
    %c0_6 = arith.constant 0 : index
    %9 = vector.load %arg4[%c0_5, %c0_6] : memref<192x192xbf16, #tpu.memory_space<vmem>>, vector<192x192xbf16>
    %cst_7 = arith.constant dense<0.000000e+00> : vector<16x192xf32>
    %10 = tpu.matmul %8, %9, %cst_7 {dimension_numbers = #tpu.dot_dimension_numbers<[1], [0], [0], [1], [0, 0, 1, 1], [], []>} : vector<16x192xbf16>, vector<192x192xbf16>, vector<16x192xf32> -> vector<16x192xf32>
    %c0_8 = arith.constant 0 : index
    %c0_9 = arith.constant 0 : index
    %11 = vector.load %arg5[%c0_8, %c0_9] : memref<1x192xf32, #tpu.memory_space<vmem>>, vector<1x192xf32>
    %12 = vector.broadcast %11 : vector<1x192xf32> to vector<16x192xf32>
    %13 = arith.addf %10, %12 : vector<16x192xf32>
    %14 = arith.truncf %13 : vector<16x192xf32> to vector<16x192xbf16>
    %15 = math.tanh %14 : vector<16x192xbf16>
    %c0_10 = arith.constant 0 : index
    %c0_11 = arith.constant 0 : index
    %16 = vector.load %arg6[%c0_10, %c0_11] : memref<192x128xbf16, #tpu.memory_space<vmem>>, vector<192x128xbf16>
    %cst_12 = arith.constant dense<0.000000e+00> : vector<16x128xf32>
    %17 = tpu.matmul %15, %16, %cst_12 {dimension_numbers = #tpu.dot_dimension_numbers<[1], [0], [0], [1], [0, 0, 1, 1], [], []>} : vector<16x192xbf16>, vector<192x128xbf16>, vector<16x128xf32> -> vector<16x128xf32>
    %c0_13 = arith.constant 0 : index
    %c0_14 = arith.constant 0 : index
    %18 = vector.load %arg7[%c0_13, %c0_14] : memref<1x128xf32, #tpu.memory_space<vmem>>, vector<1x128xf32>
    %19 = vector.broadcast %18 : vector<1x128xf32> to vector<16x128xf32>
    %20 = arith.addf %17, %19 : vector<16x128xf32>
    %21 = arith.truncf %20 : vector<16x128xf32> to vector<16x128xbf16>
    %c0_15 = arith.constant 0 : index
    %c0_16 = arith.constant 0 : index
    %22 = vector.load %arg8[%c0_15, %c0_16] : memref<16x128xbf16, #tpu.memory_space<vmem>>, vector<16x128xbf16>
    tpu.vector_store %arg8[%c0_15, %c0_16], %21 {strides = array<i32>} : memref<16x128xbf16, #tpu.memory_space<vmem>>, vector<16x128xbf16>,
    return
  }
  func.func @transform_0(%arg0: i32) -> (i32, i32) {
    %c0_i32 = arith.constant 0 : i32
    %c0_i32_0 = arith.constant 0 : i32
    return %arg0, %c0_i32 : i32, i32
  }
  func.func @transform_1(%arg0: i32) -> (i32, i32) {
    %c0_i32 = arith.constant 0 : i32
    %c0_i32_0 = arith.constant 0 : i32
    %c0_i32_1 = arith.constant 0 : i32
    return %c0_i32, %c0_i32_0 : i32, i32
  }
  func.func @transform_2(%arg0: i32) -> (i32, i32) {
    %c0_i32 = arith.constant 0 : i32
    %c0_i32_0 = arith.constant 0 : i32
    %c0_i32_1 = arith.constant 0 : i32
    return %c0_i32, %c0_i32_0 : i32, i32
  }
  func.func @transform_3(%arg0: i32) -> (i32, i32) {
    %c0_i32 = arith.constant 0 : i32
    %c0_i32_0 = arith.constant 0 : i32
    %c0_i32_1 = arith.constant 0 : i32
    return %c0_i32, %c0_i32_0 : i32, i32
  }
  func.func @transform_4(%arg0: i32) -> (i32, i32) {
    %c0_i32 = arith.constant 0 : i32
    %c0_i32_0 = arith.constant 0 : i32
    %c0_i32_1 = arith.constant 0 : i32
    return %c0_i32, %c0_i32_0 : i32, i32
  }
  func.func @transform_5(%arg0: i32) -> (i32, i32) {
    %c0_i32 = arith.constant 0 : i32
    %c0_i32_0 = arith.constant 0 : i32
    %c0_i32_1 = arith.constant 0 : i32
    return %c0_i32, %c0_i32_0 : i32, i32
  }
  func.func @transform_6(%arg0: i32) -> (i32, i32) {
    %c0_i32 = arith.constant 0 : i32
    %c0_i32_0 = arith.constant 0 : i32
    %c0_i32_1 = arith.constant 0 : i32
    return %c0_i32, %c0_i32_0 : i32, i32
  }
  func.func @transform_7(%arg0: i32) -> (i32, i32) {
    %c0_i32 = arith.constant 0 : i32
    %c0_i32_0 = arith.constant 0 : i32
    return %arg0, %c0_i32 : i32, i32
  }
}

</mosaic_0001>

<bundles_post_ra>
// kernel: fused_policy_value_pallas.1
= control target key start
LH: loop header
LB: loop body
LE: loop exit
PB: predicated region body
PF: predicated region fallthrough
CT: control target
= control target key end

     0   :  { %12 = vsyncpa [#allocation3], 0  ;;  %s957_s0 = inlined_call_operand.hbm [shape: f32[4,16], index: 0, kind: input, shape index: {}]   ;;  %s958_s1 = inlined_call_operand.hbm [shape: bf16[16,192], index: 1, kind: input, shape index: {}]   ;;  %s959_s2 = inlined_call_operand.vmem [shape: f32[1,192], index: 2, kind: input, shape index: {}]   ;;  %s960_s3 = inlined_call_operand.hbm [shape: bf16[192,192], index: 3, kind: input, shape index: {}]   ;;  %s961_s4 = inlined_call_operand.vmem [shape: f32[1,192], index: 4, kind: input, shape index: {}]   ;;  %s962_s5 = inlined_call_operand.hbm [shape: bf16[192,128], index: 5, kind: input, shape index: {}]   ;;  %s963_s6 = inlined_call_operand.vmem [shape: f32[1,128], index: 6, kind: input, shape index: {}]   ;;  %s964_s7 = inlined_call_operand.hbm [shape: bf16[4,128], index: 7, kind: output, shape index: {}]  }
   0x1   :  { %13 = vsyncpa [#allocation6], 0 }
   0x2   :  { %14 = vsyncpa [#allocation9], 0 }
   0x3   :  { %15 = vsyncpa [#allocation4], 0 }
   0x4   :  { %20 = vsyncadd [#allocation3], 192  ;;  %s796_s24 = smov [#allocation5]   ;;  %s678_s28 = scalar_lea.hbm %s958_s1, 256 }
   0x5   :  { %s33_s25 = sshll.u32 %s796_s24, 4  ;;  %p679_p0 = scmp.ne.s32.totalorder %s958_s1, %s678_s28  ;;  %s34_s25 = int_to_ptr.vmem [resolvable:$true] %s33_s25 }
   0x6   :  { %p682_p1 = scmp.lt.u32.totalorder %s678_s28, %s958_s1 }
   0x8   :  { %p684_p2 = pnand %p682_p1, %p679_p0 }
   0xa   :  { %687 = shalt.err (!%p684_p2)
}
   0xb   :  { %s688_s10 = scalar_lea.vmem %s34_s25, 256  ;;  %p693_p4 = scmp.lt.s32.totalorder %s34_s25, %s34_s25 }
   0xc   :  { %p689_p3 = scmp.ne.s32.totalorder %s34_s25, %s688_s10  ;;  %p694_p5 = scmp.lt.s32.totalorder %s688_s10, %s688_s10 }
   0xe   :  { %p695_p6 = por %p694_p5, %p693_p4 }
  0x10   :  { %p696_p7 = pnand %p695_p6, %p689_p3 }
  0x12   :  { %699 = shalt.err (!%p696_p7)
}
  0x13   :  { %s797_s11 = smov 128   ;;  %s798_s12 = smov 8  }
  0x14   :  { %39 = dma.hbm_to_vmem [thread:$0]  %s958_s1, 256, %s34_s25, [#allocation6], %s797_s11, %s797_s11, %s798_s12  }
  0x15   :  { %s799_s15 = smov [#allocation2]   ;;  %s700_s19 = scalar_lea.hbm %s957_s0, 64 }
  0x16   :  { %s21_s16 = sshll.u32 %s799_s15, 4  ;;  %p701_p8 = scmp.ne.s32.totalorder %s957_s0, %s700_s19  ;;  %s22_s16 = int_to_ptr.vmem [resolvable:$true] %s21_s16 }
  0x17   :  { %p704_p9 = scmp.lt.u32.totalorder %s700_s19, %s957_s0 }
  0x19   :  { %p706_p10 = pnand %p704_p9, %p701_p8 }
  0x1b   :  { %709 = shalt.err (!%p706_p10)
}
  0x1c   :  { %s710_s24 = scalar_lea.vmem %s22_s16, 64  ;;  %s714_s1 = scalar_lea.vmem %s22_s16, 256 }
  0x1d   :  { %p711_p11 = scmp.ne.s32.totalorder %s22_s16, %s710_s24  ;;  %p715_p12 = scmp.lt.s32.totalorder %s22_s16, %s22_s16 }
  0x1e   :  { %p716_p13 = scmp.lt.s32.totalorder %s714_s1, %s710_s24 }
  0x20   :  { %p717_p0 = por %p716_p13, %p715_p12 }
  0x22   :  { %p718_p1 = pnand %p717_p0, %p711_p11 }
  0x24   :  { %721 = shalt.err (!%p718_p1)
}
  0x25   :  { %s800_s25 = smov 64   ;;  %s801_s26 = smov 4  }
  0x26   :  { %27 = dma.hbm_to_vmem [thread:$0]  %s957_s0, 64, %s22_s16, [#allocation3], %s800_s25, %s800_s25, %s801_s26  }
  0x27   :  { %s802_s29 = smov [#allocation7]   ;;  %s803_s8 = smov [#allocation8]  }
  0x28   :  { %s47_s30 = sshll.u32 %s802_s29, 4  ;;  %s61_s9 = sshll.u32 %s803_s8, 4  ;;  %s48_s30 = int_to_ptr.vmem [resolvable:$true] %s47_s30  ;;  %s879_s9 = int_to_ptr.vmem [resolvable:$true] %s61_s9 }
  0x29   :  { %s722_s14 = scalar_lea.hbm %s960_s3, 3072 }
  0x2a   :  { %p723_p2 = scmp.ne.s32.totalorder %s960_s3, %s722_s14  ;;  %p726_p3 = scmp.lt.u32.totalorder %s722_s14, %s960_s3 }
  0x2c   :  { %p728_p4 = pnand %p726_p3, %p723_p2 }
  0x2e   :  { %731 = shalt.err (!%p728_p4)
}
  0x2f   :  { %s732_s0 = scalar_lea.vmem %s48_s30, 3072  ;;  %p737_p6 = scmp.lt.s32.totalorder %s48_s30, %s48_s30 }
  0x30   :  { %p733_p5 = scmp.ne.s32.totalorder %s48_s30, %s732_s0  ;;  %p738_p7 = scmp.lt.s32.totalorder %s732_s0, %s732_s0 }
  0x32   :  { %p739_p8 = por %p738_p7, %p737_p6 }
  0x34   :  { %p740_p9 = pnand %p739_p8, %p733_p5 }
  0x36   :  { %743 = shalt.err (!%p740_p9)
}
  0x37   :  { %53 = dma.hbm_to_vmem [thread:$0]  %s960_s3, 3072, %s48_s30, [#allocation6], %s797_s11, %s797_s11, %s798_s12  }
  0x38   :  { %s744_s23 = scalar_lea.hbm %s962_s5, 1536 }
  0x39   :  { %p745_p10 = scmp.ne.s32.totalorder %s962_s5, %s744_s23  ;;  %p748_p11 = scmp.lt.u32.totalorder %s744_s23, %s962_s5 }
  0x3b   :  { %p750_p12 = pnand %p748_p11, %p745_p10 }
  0x3d   :  { %753 = shalt.err (!%p750_p12)
}
  0x3e   :  { %s754_s29 = scalar_lea.vmem %s879_s9, 1536  ;;  %p759_p0 = scmp.lt.s32.totalorder %s879_s9, %s879_s9 }
  0x3f   :  { %p755_p13 = scmp.ne.s32.totalorder %s879_s9, %s754_s29  ;;  %p760_p1 = scmp.lt.s32.totalorder %s754_s29, %s754_s29 }
  0x41   :  { %p761_p2 = por %p760_p1, %p759_p0 }
  0x43   :  { %p762_p3 = pnand %p761_p2, %p755_p13 }
  0x45   :  { %765 = shalt.err (!%p762_p3)
}
  0x46   :  { %67 = dma.hbm_to_vmem [thread:$0]  %s962_s5, 1536, %s879_s9, [#allocation9], %s800_s25, %s800_s25, %s801_s26  }
  0x47   :  { %788 = dma.done.wait [#allocation3], 256  }
  0x48   :  { %789 = vsyncadd [#allocation3], 4294967040 }
  0x49   :  { %790 = dma.done.wait [#allocation6], 3328  }
  0x4a   :  { %791 = vsyncadd [#allocation6], 4294963968 }
  0x4b   :  { %792 = dma.done.wait [#allocation9], 1536  }
  0x4c   :  { %793 = vsyncadd [#allocation9], 4294965760  ;;  %v804_v0 = vmov 0   ;;  %v619_v1 = vld [vmem:[#allocation5 + $0x4] ss:$8 sps:$4 sm:$0xff]   ;;  %v83_v3 = vld [vmem:[#allocation2] sm:$0xff]  ;;  %v90_v37 = vlaneseq }
  0x4d   :  { %146 = vmatprep.mubr.bf16.mxu0 %v804_v0  ;;  %v621_v2 = vld [vmem:[#allocation5] ss:$8 sps:$4 sm:$0xff]   ;;  %v84_v4 = vld [vmem:[#allocation2 + $0x8] sm:$0xff]  ;;  %114 = vmatprep.subr.bf16.mxu0 %v619_v1  ;;  %vm110_vm0 = vcmask 130048   ;;  %v625_v8 = vld [vmem:[#allocation7 + $0x14] ss:$8 sps:$4 sm:$0xff]  }
  0x4e   :  { %v85_v5 = vpack.c.bf16 %v84_v4, %v83_v3  ;;  %v622_v6 = vld [vmem:[#allocation7 + $0x4] ss:$8 sps:$4 sm:$0xff]   ;;  %115 = vmatpush1.bf16.msra.mxu0 %v621_v2  ;;  %v624_v7 = vld [vmem:[#allocation7] ss:$8 sps:$4 sm:$0xff]   ;;  %v627_v9 = vld [vmem:[#allocation7 + $0x10] ss:$8 sps:$4 sm:$0xff]  }
  0x4f   :  { %321 = vmatprep.subr.bf16.mxu1 %v622_v6  ;;  %474 = vmatprep.subr.bf16.mxu0 %v804_v0  ;;  %v628_v10 = vld [vmem:[#allocation7 + $0x24] ss:$8 sps:$4 sm:$0xff]   ;;  %v630_v11 = vld [vmem:[#allocation7 + $0x20] ss:$8 sps:$4 sm:$0xff]   ;;  %v631_v12 = vld [vmem:[#allocation7 + $0x34] ss:$8 sps:$4 sm:$0xff]  }
  0x50   :  { %322 = vmatpush1.bf16.msra.mxu1 %v624_v7  ;;  %v633_v13 = vld [vmem:[#allocation7 + $0x30] ss:$8 sps:$4 sm:$0xff]   ;;  %v634_v14 = vld [vmem:[#allocation7 + $0x44] ss:$8 sps:$4 sm:$0xff]   ;;  %v636_v15 = vld [vmem:[#allocation7 + $0x40] ss:$8 sps:$4 sm:$0xff]  }
  0x51   :  { %563 = vmatmul.mubr.msk.bf16.vlgmr.msra.gmra.mrb[0].mxu0 %vm110_vm0, %v85_v5  ;;  %323 = vmatprep.subr.bf16.mxu1 %v625_v8  ;;  %v637_v16 = vld [vmem:[#allocation7 + $0x54] ss:$8 sps:$4 sm:$0xff]   ;;  %v639_v17 = vld [vmem:[#allocation7 + $0x50] ss:$8 sps:$4 sm:$0xff]   ;;  %v640_v18 = vld [vmem:[#allocation7 + $0x64] ss:$8 sps:$4 sm:$0xff]  }
  0x52   :  { %v642_v19 = vld [vmem:[#allocation7 + $0x60] ss:$8 sps:$4 sm:$0xff]   ;;  %v643_v20 = vld [vmem:[#allocation7 + $0x74] ss:$8 sps:$4 sm:$0xff]   ;;  %v645_v21 = vld [vmem:[#allocation7 + $0x70] ss:$8 sps:$4 sm:$0xff]  }
  0x53   :  { %v646_v22 = vld [vmem:[#allocation7 + $0x84] ss:$8 sps:$4 sm:$0xff]   ;;  %v648_v23 = vld [vmem:[#allocation7 + $0x80] ss:$8 sps:$4 sm:$0xff]   ;;  %v649_v24 = vld [vmem:[#allocation7 + $0x94] ss:$8 sps:$4 sm:$0xff]  }
  0x54   :  { %324 = vmatpush1.bf16.msra.mxu1 %v627_v9  ;;  %v651_v25 = vld [vmem:[#allocation7 + $0x90] ss:$8 sps:$4 sm:$0xff]   ;;  %v652_v26 = vld [vmem:[#allocation7 + $0xa4] ss:$8 sps:$4 sm:$0xff]   ;;  %v654_v27 = vld [vmem:[#allocation7 + $0xa0] ss:$8 sps:$4 sm:$0xff]  }
  0x55   :  { %325 = vmatprep.subr.bf16.mxu1 %v628_v10  ;;  %v655_v28 = vld [vmem:[#allocation7 + $0xb4] ss:$8 sps:$4 sm:$0xff]   ;;  %v657_v29 = vld [vmem:[#allocation7 + $0xb0] ss:$8 sps:$4 sm:$0xff]   ;;  %v658_v30 = vld [vmem:[#allocation8] sm:$0xff]   ;;  %v925_v38 = vshrl.u32 %v90_v37, 7 }
  0x56   :  { %475 = vmatpush1.bf16.msra.mxu0 %v658_v30  ;;  %v659_v31 = vld [vmem:[#allocation8 + $0x8] sm:$0xff]   ;;  %v660_v32 = vld [vmem:[#allocation8 + $0x10] sm:$0xff]   ;;  %v661_v33 = vld [vmem:[#allocation8 + $0x18] sm:$0xff]   ;;  %vm317_vm1 = vcmask 523264  }
  0x57   :  { %476 = vmatprep.subr.bf16.mxu0 %v804_v0  ;;  %v662_v34 = vld [vmem:[#allocation8 + $0x20] sm:$0xff]   ;;  %v663_v35 = vld [vmem:[#allocation8 + $0x28] sm:$0xff]   ;;  %v664_v36 = vld [vmem:[#allocation8 + $0x30] sm:$0xff]   ;;  %v92_v39 = vsub.s32 0, %v925_v38  ;;  %v96_v41 = vsub.s32 1, %v925_v38 }
  0x58   :  { %326 = vmatpush1.bf16.msra.mxu1 %v630_v11  ;;  %v88_v40 = vld [vmem:[%s959_s2] sm:$0x3]  ;;  %v665_v56 = vld [vmem:[#allocation8 + $0x38] sm:$0xff]   ;;  %v667_v58 = vld [vmem:[#allocation8 + $0x48] sm:$0xff]  }
  0x59   :  { %327 = vmatprep.subr.bf16.mxu1 %v631_v12  ;;  %v93_v42 = vrot.slane %v88_v40, %v92_v39  ;;  %v97_v44 = vrot.slane %v88_v40, %v96_v41  ;;  %v666_v57 = vld [vmem:[#allocation8 + $0x40] sm:$0xff]   ;;  %v668_v59 = vld [vmem:[#allocation8 + $0x50] sm:$0xff]   ;;  %v669_v60 = vld [vmem:[#allocation8 + $0x58] sm:$0xff]   ;;  %v805_v12 = vmov 1983009808  }
  0x5a   :  { %477 = vmatpush1.bf16.msra.mxu0 %v659_v31  ;;  %v185_v61 = vld [vmem:[%s961_s4] sm:$0x3] }
  0x5b   :  { %478 = vmatprep.subr.bf16.mxu0 %v804_v0  ;;  %v190_v62 = vrot.slane %v185_v61, %v92_v39  ;;  %v194_v1 = vrot.slane %v185_v61, %v96_v41 }
  0x5c   :  { %328 = vmatpush1.bf16.msra.mxu1 %v633_v13  ;;  %v519_v13 = vunpack.c.l.s4 %v805_v12 }
  0x5d   :  { %329 = vmatprep.subr.bf16.mxu1 %v634_v14 }
  0x5e   :  { %479 = vmatpush1.bf16.msra.mxu0 %v660_v32  ;;  %v520_v14 = vunpack.c.0.s8 %v519_v13 }
  0x5f   :  { %480 = vmatprep.subr.bf16.mxu0 %v804_v0 }
  0x60   :  { %330 = vmatpush1.bf16.msra.mxu1 %v636_v15  ;;  %v589_v15 = vld [vmem:[%s963_s6] ss:$0 sm:$0xff] }
  0x61   :  { %331 = vmatprep.subr.bf16.mxu1 %v637_v16 }
  0x62   :  { %481 = vmatpush1.bf16.msra.mxu0 %v661_v33 }
  0x63   :  { %482 = vmatprep.subr.bf16.mxu0 %v804_v0 }
  0x64   :  { %332 = vmatpush1.bf16.msra.mxu1 %v639_v17 }
  0x65   :  { %333 = vmatprep.subr.bf16.mxu1 %v640_v18 }
  0x66   :  { %483 = vmatpush1.bf16.msra.mxu0 %v662_v34 }
  0x67   :  { %484 = vmatprep.subr.bf16.mxu0 %v804_v0 }
  0x68   :  { %334 = vmatpush1.bf16.msra.mxu1 %v642_v19 }
  0x69   :  { %335 = vmatprep.subr.bf16.mxu1 %v643_v20 }
  0x6a   :  { %485 = vmatpush1.bf16.msra.mxu0 %v663_v35 }
  0x6b   :  { %486 = vmatprep.subr.bf16.mxu0 %v804_v0 }
  0x6c   :  { %336 = vmatpush1.bf16.msra.mxu1 %v645_v21  ;;  %v523_v21 = vsub.s32 %v520_v14, %v925_v38 }
  0x6d   :  { %337 = vmatprep.subr.bf16.mxu1 %v646_v22 }
  0x6e   :  { %487 = vmatpush1.bf16.msra.mxu0 %v664_v36 }
  0x6f   :  { %488 = vmatprep.subr.bf16.mxu0 %v804_v0 }
  0x70   :  { %338 = vmatpush1.bf16.msra.mxu1 %v648_v23 }
  0x71   :  { %339 = vmatprep.subr.bf16.mxu1 %v649_v24 }
  0x72   :  { %489 = vmatpush1.bf16.msra.mxu0 %v665_v56 }
  0x73   :  { %490 = vmatprep.subr.bf16.mxu0 %v804_v0 }
  0x74   :  { %340 = vmatpush1.bf16.msra.mxu1 %v651_v25 }
  0x75   :  { %341 = vmatprep.subr.bf16.mxu1 %v652_v26 }
  0x76   :  { %491 = vmatpush1.bf16.msra.mxu0 %v666_v57 }
  0x77   :  { %492 = vmatprep.subr.bf16.mxu0 %v804_v0 }
  0x78   :  { %342 = vmatpush1.bf16.msra.mxu1 %v654_v27 }
  0x79   :  { %343 = vmatprep.subr.bf16.mxu1 %v655_v28 }
  0x7a   :  { %493 = vmatpush1.bf16.msra.mxu0 %v667_v58 }
  0x7b   :  { %494 = vmatprep.subr.bf16.mxu0 %v804_v0 }
  0x7c   :  { %344 = vmatpush1.bf16.msra.mxu1 %v657_v29 }
  0x7e   :  { %495 = vmatpush1.bf16.msra.mxu0 %v668_v59 }
  0x7f   :  { %496 = vmatprep.subr.bf16.mxu0 %v804_v0 }
  0x82   :  { %497 = vmatpush1.bf16.msra.mxu0 %v669_v60 }
 0x124   :  { %v148_v43 = vpop.f32.mrb[0].mxu0 }
 0x125   :  { %v150_v45 = vpop.f32.mrb[1].mxu0  ;;  %v149_v47 = vadd.f32 %v148_v43, %v93_v42 }
 0x126   :  { %v152_v46 = vpop.f32.mrb[2].mxu0  ;;  %v151_v50 = vadd.f32 %v150_v45, %v97_v44 }
 0x127   :  { %v153_v48 = vadd.f32 %v152_v46, %v93_v42  ;;  %v154_v49 = vpop.f32.mrb[3].mxu0 }
 0x128   :  { %v155_v51 = vadd.f32 %v154_v49, %v97_v44 }
 0x129   :  { %v157_v52 = vpack.c.bf16 %v153_v48, %v149_v47 }
 0x12a   :  { %v158_v53 = vpack.c.bf16 %v155_v51, %v151_v50 }
 0x12c   :  { %670 = vtanh.bf16 %v158_v53 }
 0x12d   :  { %672 = vtanh.bf16 %v157_v52 }
 0x137   :  { %v671_v54 = vpop.eup %670 }
 0x138   :  { %v673_v55 = vpop.eup %672  ;;  %588 = vmatprep.mubr.msk.bf16.mxu1 %vm317_vm1, %v671_v54 }
 0x139   :  { %354 = vmatmul.mubr.bf16.vlgmr.msra.gmra.mrb[0].mxu1 %v673_v55 }
 0x20c   :  { %v355_v63 = vpop.f32.mrb[0].mxu1 }
 0x20d   :  { %v357_v2 = vpop.f32.mrb[1].mxu1  ;;  %v356_v4 = vadd.f32 %v355_v63, %v190_v62 }
 0x20e   :  { %v359_v3 = vpop.f32.mrb[2].mxu1  ;;  %v358_v7 = vadd.f32 %v357_v2, %v194_v1 }
 0x20f   :  { %v360_v5 = vadd.f32 %v359_v3, %v190_v62  ;;  %v361_v6 = vpop.f32.mrb[3].mxu1 }
 0x210   :  { %v362_v8 = vadd.f32 %v361_v6, %v194_v1 }
 0x211   :  { %v364_v9 = vpack.c.bf16 %v360_v5, %v356_v4 }
 0x212   :  { %v365_v10 = vpack.c.bf16 %v362_v8, %v358_v7 }
 0x214   :  { %674 = vtanh.bf16 %v365_v10 }
 0x215   :  { %676 = vtanh.bf16 %v364_v9 }
 0x21f   :  { %v675_v0 = vpop.eup %674 }
 0x220   :  { %v677_v11 = vpop.eup %676  ;;  %602 = vmatprep.mubr.msk.bf16.mxu0 %vm317_vm1, %v675_v0 }
 0x221   :  { %507 = vmatmul.mubr.bf16.vlgmr.msra.gmra.mrb[4].mxu0 %v677_v11 }
 0x2f4   :  { %v508_v16 = vpop.f32.mrb[4].mxu0 }
 0x2f5   :  { %v510_v17 = vpop.f32.mrb[5].mxu0  ;;  %v509_v19 = vadd.f32 %v589_v15, %v508_v16 }
 0x2f6   :  { %v511_v18 = vpop.f32.mrb[6].mxu0 }
 0x2f7   :  { %v512_v20 = vadd.f32 %v589_v15, %v511_v18  ;;  %v513_v22 = vpop.f32.mrb[7].mxu0 }
 0x2f9   :  { %v515_v23 = vpack.c.bf16 %v512_v20, %v509_v19  ;;  %v603_v24 = vpack.c.bf16 %v512_v20, %v512_v20 }
 0x2fb   :  { %v524_v25 = vrot.slane %v515_v23, %v523_v21  ;;  %v531_v26 = vrot.slane %v603_v24, %v523_v21  ;;  %604 = vst.sshfl [vmem:[#allocation10] sm:$0x3 pattern:$0x76325410] %v515_v23 }
 0x2fc   :  { %605 = vst.sshfl [vmem:[#allocation10 + $0x4] sm:$0x3 pattern:$0x76325410] %v603_v24 }
 0x2fd   :  { %v532_v27 = vcombine.high %v524_v25, %v524_v25  ;;  %v533_v28 = vcombine.high %v531_v26, %v531_v26 }
 0x2ff   :  { %539 = vst [vmem:[#allocation10 + $0x2] sm:$0x3] %v532_v27  ;;  %541 = vst [vmem:[#allocation10 + $0x6] sm:$0x3] %v533_v28 }
 0x300   :  { %546 = vsyncadd [#allocation4], 96  ;;  %s806_s6 = smov [#allocation10]  }
 0x301   :  { %s547_s30 = sshll.u32 %s806_s6, 4  ;;  %s548_s30 = int_to_ptr.vmem [resolvable:$true] %s547_s30 }
 0x302   :  { %s766_s8 = scalar_lea.vmem %s548_s30, 32  ;;  %s770_s9 = scalar_lea.vmem %s548_s30, 128 }
 0x303   :  { %p767_p4 = scmp.ne.s32.totalorder %s548_s30, %s766_s8  ;;  %p771_p5 = scmp.lt.s32.totalorder %s548_s30, %s548_s30 }
 0x304   :  { %p772_p6 = scmp.lt.s32.totalorder %s770_s9, %s766_s8 }
 0x306   :  { %p773_p7 = por %p772_p6, %p771_p5 }
 0x308   :  { %p774_p8 = pnand %p773_p7, %p767_p4 }
 0x30a   :  { %777 = shalt.err (!%p774_p8)
}
 0x30b   :  { %s778_s14 = scalar_lea.hbm %s964_s7, 32 }
 0x30c   :  { %p779_p9 = scmp.ne.s32.totalorder %s964_s7, %s778_s14  ;;  %p782_p10 = scmp.lt.u32.totalorder %s778_s14, %s964_s7 }
 0x30e   :  { %p784_p11 = pnand %p782_p10, %p779_p9 }
 0x310   :  { %787 = shalt.err (!%p784_p11)
}
 0x311   :  { %s807_s0 = smov 32   ;;  %s808_s16 = smov 2  }
 0x312   :  { %553 = dma.vmem_to_hbm [thread:$0]  %s548_s30, 32, %s964_s7, [#allocation4], %s807_s0, %s807_s0, %s808_s16  }
 0x313   :  { %794 = dma.done.wait [#allocation4], 128  }
 0x314   :  { %795 = vsyncadd [#allocation4], 4294967168 }
 0x315   :  { %557 = vsyncpa [#allocation3], 1 }
 0x316   :  { %558 = vsyncpa [#allocation6], 1 }
 0x317   :  { %559 = vsyncpa [#allocation9], 1 }
 0x318   :  { %560 = vsyncpa [#allocation4], 1 }

</bundles_post_ra>
